<compile_context>
chip_gen: v7x
topology: tpu7x:2x2x1
jax: 0.10.0
libtpu: 0.0.40
codegen_flags: <defaults>
</compile_context>

<pallas_src>
import jax
import jax.numpy as jnp
from jax.experimental import pallas as pl
from jax.experimental.pallas import tpu as pltpu

_LANE = 128
_SUBLANE = 8


# --------------------------------------------------------------------------- #
# Kernel
# --------------------------------------------------------------------------- #
def _elementwise_terms(x, t):
    """Shared elementwise math (x, t already f32): returns (bce, p, p*t).

    Stable BCE-with-logits and sigmoid share one exp(-|x|):
      bce = max(x, 0) - x*t + log1p(e)
      p   = sigmoid(x) = where(x >= 0, 1, e) / (1 + e)     (exact branch form)
    """
    e = jnp.exp(-jnp.abs(x))
    one_plus_e = 1.0 + e
    bce = jnp.maximum(x, 0.0) - x * t + jnp.log1p(e)
    p = jnp.where(x >= 0.0, 1.0, e) / one_plus_e
    return bce, p, p * t


def _bce_dice_kernel(x_ref, t_ref, bce_ref, inter_ref, psum_ref, tsum_ref):
    # grid = (row_blocks, feat_blocks). The feature axis (axis 1) is the
    # reduction axis: the outputs keep the same block index across it and act
    # as resident accumulators.
    @pl.when(pl.program_id(1) == 0)
    def _init():
        bce_ref[...] = jnp.zeros_like(bce_ref)
        inter_ref[...] = jnp.zeros_like(inter_ref)
        psum_ref[...] = jnp.zeros_like(psum_ref)
        tsum_ref[...] = jnp.zeros_like(tsum_ref)

    rows, tk = x_ref.shape
    lane_w = bce_ref.shape[-1]

    if lane_w == _LANE and tk % _LANE == 0:
        # Lane-wide accumulation: stream 128-column chunks, fold them with VPU
        # adds into (rows, 128) register accumulators, defer the cross-lane
        # reduce to the JAX epilogue (outputs are lane-dense, unmasked stores).
        zero = jnp.zeros((rows, _LANE), jnp.float32)
        bce_acc, inter_acc, p_acc, t_acc = zero, zero, zero, zero
        for j in range(tk // _LANE):
            lo = j * _LANE
            x = x_ref[:, lo:lo + _LANE].astype(jnp.float32)
            t = t_ref[:, lo:lo + _LANE].astype(jnp.float32)
            bce, p, inter = _elementwise_terms(x, t)
            bce_acc = bce_acc + bce
            inter_acc = inter_acc + inter
            p_acc = p_acc + p
            t_acc = t_acc + t
        bce_ref[...] += bce_acc
        inter_ref[...] += inter_acc
        psum_ref[...] += p_acc
        tsum_ref[...] += t_acc
    else:
        # Fallback for feature tiles that are not a multiple of 128
        # (block == full feature dim in that case): per-row XLU reduce.
        x = x_ref[...].astype(jnp.float32)
        t = t_ref[...].astype(jnp.float32)
        bce, p, inter = _elementwise_terms(x, t)
        bce_ref[...] += jnp.sum(bce, axis=-1, keepdims=True)
        inter_ref[...] += jnp.sum(inter, axis=-1, keepdims=True)
        psum_ref[...] += jnp.sum(p, axis=-1, keepdims=True)
        tsum_ref[...] += jnp.sum(t, axis=-1, keepdims=True)


# --------------------------------------------------------------------------- #
# Tiling heuristics
# --------------------------------------------------------------------------- #
def _choose_split(n, f, target_rows=64):
    """Split factor s (dividing f): view (n, f) as (n*s, f//s) so sublanes are
    filled and the feature dim stays lane-aligned."""
    best_s, best_key = 1, None
    for s in range(1, min(f, 4096) + 1):
        if f % s:
            continue
        rows, feat = n * s, f // s
        if feat < _LANE:
            break
        key = (
            feat % _LANE == 0,        # lane-aligned feature dim
            rows >= _SUBLANE,         # sublanes filled
            rows % _SUBLANE == 0,     # unmasked sublane tiles
            -abs(rows - target_rows)  # rows near the target
        )
        if best_key is None or key > best_key:
            best_s, best_key = s, key
    return best_s


def _choose_row_block(rows):
    """Multiple-of-8 divisor of rows; aim for >=2 row blocks so the 'parallel'
    axis can be split across v7x's two TensorCores."""
    if rows % _SUBLANE != 0 or rows < 2 * _SUBLANE:
        return rows
    cap = min(rows // 2, 128)
    best = _SUBLANE
    for cand in range(_SUBLANE, cap + 1, _SUBLANE):
        if rows % cand == 0:
            best = cand
    return best


def _choose_feat_tile(feat, row_blk, itemsize_sum,
                      budget_bytes=8 * 1024 * 1024, max_tk=16384):
    """Largest 128-multiple divisor of feat whose double-buffered two-input
    footprint stays inside budget_bytes (falls back to the full row)."""
    if feat % _LANE != 0:
        # Pathological feature sizes: take the whole row (kernel fallback path).
        return feat
    cap_cols = max(_LANE, budget_bytes // (2 * row_blk * itemsize_sum))
    target = min(feat, cap_cols, max_tk)
    target -= target % _LANE
    target = max(target, _LANE)
    best = _LANE
    for cand in range(_LANE, target + 1, _LANE):
        if feat % cand == 0:
            best = cand
    return best


# --------------------------------------------------------------------------- #
# Wrapper
# --------------------------------------------------------------------------- #
def bce_dice_loss(logits, target):
    """logits/target: same-shape NCHW (or any N x ...) arrays. Scalar f32 loss."""
    assert logits.shape == target.shape
    n = logits.shape[0]
    f = 1
    for d in logits.shape[1:]:
        f *= d

    # Sublane packing: (n, f) -> (rows, feat) with rows = n * s.
    s = _choose_split(n, f)
    rows, feat = n * s, f // s

    # Keep native dtype (bf16/f16 halves HBM traffic); kernel up-casts per tile.
    x = logits.reshape(rows, feat)
    t = target.reshape(rows, feat)

    row_blk = _choose_row_block(rows)
    itemsize_sum = x.dtype.itemsize + t.dtype.itemsize
    tk = _choose_feat_tile(feat, row_blk, itemsize_sum)
    lane_w = _LANE if tk % _LANE == 0 else 1

    grid = (rows // row_blk, feat // tk)
    acc_shape = jax.ShapeDtypeStruct((rows, lane_w), jnp.float32)
    acc_spec = pl.BlockSpec((row_blk, lane_w), lambda i, k: (i, 0))

    bce_l, inter_l, p_l, t_l = pl.pallas_call(
        _bce_dice_kernel,
        out_shape=(acc_shape,) * 4,
        grid_spec=pltpu.PrefetchScalarGridSpec(
            num_scalar_prefetch=0,
            grid=grid,
            in_specs=[
                pl.BlockSpec((row_blk, tk), lambda i, k: (i, k)),
                pl.BlockSpec((row_blk, tk), lambda i, k: (i, k)),
            ],
            out_specs=[acc_spec] * 4,
        ),
        compiler_params=pltpu.CompilerParams(
            dimension_semantics=("parallel", "arbitrary"),
            vmem_limit_bytes=32 * 1024 * 1024,
        ),
    )(x, t)

    # Tiny scalar epilogue: cross-lane reduce, undo the sub-row packing,
    # combine BCE mean with the per-sample dice score.
    smooth = 1e-05
    bce = jnp.sum(bce_l) / (n * f)
    inter_row = jnp.sum(inter_l, axis=-1).reshape(n, s).sum(axis=-1)
    p_row = jnp.sum(p_l, axis=-1).reshape(n, s).sum(axis=-1)
    t_row = jnp.sum(t_l, axis=-1).reshape(n, s).sum(axis=-1)
    dice = (2.0 * inter_row + smooth) / (p_row + t_row + smooth)
    dice = 1.0 - jnp.sum(dice) / n
    return 0.5 * bce + dice


# --------------------------------------------------------------------------- #
# Pure-JAX reference + self-check
# --------------------------------------------------------------------------- #
def _reference(logits, target):
    x = logits.astype(jnp.float32)
    t = target.astype(jnp.float32)
    bce = jnp.mean(jnp.maximum(x, 0) - x * t + jnp.log1p(jnp.exp(-jnp.abs(x))))
    n = x.shape[0]
    p = jax.nn.sigmoid(x).reshape(n, -1)
    tt = t.reshape(n, -1)
    smooth = 1e-05
    dice = (2.0 * jnp.sum(p * tt, axis=1) + smooth) / (
        jnp.sum(p, axis=1) + jnp.sum(tt, axis=1) + smooth)
    dice = 1.0 - jnp.sum(dice) / n
    return 0.5 * bce + dice


if __name__ == "__main__":
    key = jax.random.PRNGKey(0)
    k1, k2 = jax.random.split(key)
    # Small segmentation-style NCHW inputs.
    logits = jax.random.normal(k1, (2, 4, 16, 16), dtype=jnp.float32)
    target = (jax.random.uniform(k2, (2, 4, 16, 16)) > 0.5).astype(jnp.float32)

    loss = bce_dice_loss(logits, target)
    loss = jax.block_until_ready(loss)

    ref = _reference(logits, target)
    assert jnp.allclose(loss, ref, rtol=1e-5, atol=1e-5), (loss, ref)
    print("KERNEL_OK")
</pallas_src>

<mosaic_0001>
module attributes {stable_mosaic.version = 11 : i64} {
  func.func @_bce_dice_kernel(%arg0: i32, %arg1: i32, %arg2: memref<8x128xf32, #tpu.memory_space<vmem>>, %arg3: memref<8x128xf32, #tpu.memory_space<vmem>>, %arg4: memref<8x128xf32, #tpu.memory_space<vmem>>, %arg5: memref<8x128xf32, #tpu.memory_space<vmem>>, %arg6: memref<8x128xf32, #tpu.memory_space<vmem>>, %arg7: memref<8x128xf32, #tpu.memory_space<vmem>>) attributes {dimension_semantics = [#tpu.dimension_semantics<parallel>, #tpu.dimension_semantics<arbitrary>], iteration_bounds = array<i64: 2, 1>, scalar_prefetch = 0 : i64, scratch_operands = 0 : i64, tpu.core_type = #tpu.core_type<tc>, window_params = [{transform_indices = @transform_0, window_bounds = array<i64: 8, 128>}, {transform_indices = @transform_1, window_bounds = array<i64: 8, 128>}, {transform_indices = @transform_2, window_bounds = array<i64: 8, 128>}, {transform_indices = @transform_3, window_bounds = array<i64: 8, 128>}, {transform_indices = @transform_4, window_bounds = array<i64: 8, 128>}, {transform_indices = @transform_5, window_bounds = array<i64: 8, 128>}]} {
    %c0_i32 = arith.constant 0 : i32
    %0 = arith.cmpi eq, %arg1, %c0_i32 : i32
    %1 = arith.extui %0 : i1 to i32
    %c0_i32_0 = arith.constant 0 : i32
    %2 = arith.cmpi ne, %1, %c0_i32_0 : i32
    scf.if %2 {
      %cst_25 = arith.constant 0.000000e+00 : f32
      %40 = vector.broadcast %cst_25 : f32 to vector<8x128xf32>
      %c0_26 = arith.constant 0 : index
      %c0_27 = arith.constant 0 : index
      %41 = vector.load %arg4[%c0_26, %c0_27] : memref<8x128xf32, #tpu.memory_space<vmem>>, vector<8x128xf32>
      tpu.vector_store %arg4[%c0_26, %c0_27], %40 {strides = array<i32>} : memref<8x128xf32, #tpu.memory_space<vmem>>, vector<8x128xf32>,
      %cst_28 = arith.constant 0.000000e+00 : f32
      %42 = vector.broadcast %cst_28 : f32 to vector<8x128xf32>
      %c0_29 = arith.constant 0 : index
      %c0_30 = arith.constant 0 : index
      %43 = vector.load %arg5[%c0_29, %c0_30] : memref<8x128xf32, #tpu.memory_space<vmem>>, vector<8x128xf32>
      tpu.vector_store %arg5[%c0_29, %c0_30], %42 {strides = array<i32>} : memref<8x128xf32, #tpu.memory_space<vmem>>, vector<8x128xf32>,
      %cst_31 = arith.constant 0.000000e+00 : f32
      %44 = vector.broadcast %cst_31 : f32 to vector<8x128xf32>
      %c0_32 = arith.constant 0 : index
      %c0_33 = arith.constant 0 : index
      %45 = vector.load %arg6[%c0_32, %c0_33] : memref<8x128xf32, #tpu.memory_space<vmem>>, vector<8x128xf32>
      tpu.vector_store %arg6[%c0_32, %c0_33], %44 {strides = array<i32>} : memref<8x128xf32, #tpu.memory_space<vmem>>, vector<8x128xf32>,
      %cst_34 = arith.constant 0.000000e+00 : f32
      %46 = vector.broadcast %cst_34 : f32 to vector<8x128xf32>
      %c0_35 = arith.constant 0 : index
      %c0_36 = arith.constant 0 : index
      %47 = vector.load %arg7[%c0_35, %c0_36] : memref<8x128xf32, #tpu.memory_space<vmem>>, vector<8x128xf32>
      tpu.vector_store %arg7[%c0_35, %c0_36], %46 {strides = array<i32>} : memref<8x128xf32, #tpu.memory_space<vmem>>, vector<8x128xf32>,
    } else {
    }
    %cst = arith.constant 0.000000e+00 : f32
    %3 = vector.broadcast %cst : f32 to vector<8x128xf32>
    %c0 = arith.constant 0 : index
    %c0_1 = arith.constant 0 : index
    %4 = vector.load %arg2[%c0, %c0_1] : memref<8x128xf32, #tpu.memory_space<vmem>>, vector<8x128xf32>
    %c0_2 = arith.constant 0 : index
    %c0_3 = arith.constant 0 : index
    %5 = vector.load %arg3[%c0_2, %c0_3] : memref<8x128xf32, #tpu.memory_space<vmem>>, vector<8x128xf32>
    %6 = math.absf %4 : vector<8x128xf32>
    %cst_4 = arith.constant 0.000000e+00 : f32
    %7 = vector.broadcast %cst_4 : f32 to vector<8x128xf32>
    %8 = arith.subf %7, %6 : vector<8x128xf32>
    %9 = math.exp %8 : vector<8x128xf32>
    %cst_5 = arith.constant 1.000000e+00 : f32
    %10 = vector.broadcast %cst_5 : f32 to vector<8x128xf32>
    %11 = arith.addf %10, %9 : vector<8x128xf32>
    %cst_6 = arith.constant 0.000000e+00 : f32
    %12 = vector.broadcast %cst_6 : f32 to vector<8x128xf32>
    %13 = arith.maximumf %4, %12 : vector<8x128xf32>
    %14 = arith.mulf %4, %5 : vector<8x128xf32>
    %15 = arith.subf %13, %14 : vector<8x128xf32>
    %16 = math.log1p %9 : vector<8x128xf32>
    %17 = arith.addf %15, %16 : vector<8x128xf32>
    %cst_7 = arith.constant 0.000000e+00 : f32
    %18 = vector.broadcast %cst_7 : f32 to vector<8x128xf32>
    %19 = arith.cmpf oge, %4, %18 : vector<8x128xf32>
    %cst_8 = arith.constant 1.000000e+00 : f32
    %20 = vector.broadcast %cst_8 : f32 to vector<8x128xf32>
    %21 = arith.select %19, %20, %9 : vector<8x128xi1>, vector<8x128xf32>
    %22 = arith.divf %21, %11 : vector<8x128xf32>
    %23 = arith.mulf %22, %5 : vector<8x128xf32>
    %24 = arith.addf %3, %17 : vector<8x128xf32>
    %25 = arith.addf %3, %23 : vector<8x128xf32>
    %26 = arith.addf %3, %22 : vector<8x128xf32>
    %27 = arith.addf %3, %5 : vector<8x128xf32>
    %c0_9 = arith.constant 0 : index
    %c0_10 = arith.constant 0 : index
    %28 = vector.load %arg4[%c0_9, %c0_10] : memref<8x128xf32, #tpu.memory_space<vmem>>, vector<8x128xf32>
    %29 = arith.addf %28, %24 : vector<8x128xf32>
    %c0_11 = arith.constant 0 : index
    %c0_12 = arith.constant 0 : index
    %30 = vector.load %arg4[%c0_11, %c0_12] : memref<8x128xf32, #tpu.memory_space<vmem>>, vector<8x128xf32>
    tpu.vector_store %arg4[%c0_11, %c0_12], %29 {strides = array<i32>} : memref<8x128xf32, #tpu.memory_space<vmem>>, vector<8x128xf32>,
    %c0_13 = arith.constant 0 : index
    %c0_14 = arith.constant 0 : index
    %31 = vector.load %arg5[%c0_13, %c0_14] : memref<8x128xf32, #tpu.memory_space<vmem>>, vector<8x128xf32>
    %32 = arith.addf %31, %25 : vector<8x128xf32>
    %c0_15 = arith.constant 0 : index
    %c0_16 = arith.constant 0 : index
    %33 = vector.load %arg5[%c0_15, %c0_16] : memref<8x128xf32, #tpu.memory_space<vmem>>, vector<8x128xf32>
    tpu.vector_store %arg5[%c0_15, %c0_16], %32 {strides = array<i32>} : memref<8x128xf32, #tpu.memory_space<vmem>>, vector<8x128xf32>,
    %c0_17 = arith.constant 0 : index
    %c0_18 = arith.constant 0 : index
    %34 = vector.load %arg6[%c0_17, %c0_18] : memref<8x128xf32, #tpu.memory_space<vmem>>, vector<8x128xf32>
    %35 = arith.addf %34, %26 : vector<8x128xf32>
    %c0_19 = arith.constant 0 : index
    %c0_20 = arith.constant 0 : index
    %36 = vector.load %arg6[%c0_19, %c0_20] : memref<8x128xf32, #tpu.memory_space<vmem>>, vector<8x128xf32>
    tpu.vector_store %arg6[%c0_19, %c0_20], %35 {strides = array<i32>} : memref<8x128xf32, #tpu.memory_space<vmem>>, vector<8x128xf32>,
    %c0_21 = arith.constant 0 : index
    %c0_22 = arith.constant 0 : index
    %37 = vector.load %arg7[%c0_21, %c0_22] : memref<8x128xf32, #tpu.memory_space<vmem>>, vector<8x128xf32>
    %38 = arith.addf %37, %27 : vector<8x128xf32>
    %c0_23 = arith.constant 0 : index
    %c0_24 = arith.constant 0 : index
    %39 = vector.load %arg7[%c0_23, %c0_24] : memref<8x128xf32, #tpu.memory_space<vmem>>, vector<8x128xf32>
    tpu.vector_store %arg7[%c0_23, %c0_24], %38 {strides = array<i32>} : memref<8x128xf32, #tpu.memory_space<vmem>>, vector<8x128xf32>,
    return
  }
  func.func @transform_0(%arg0: i32, %arg1: i32) -> (i32, i32) {
    %c0_i32 = arith.constant 0 : i32
    return %arg0, %arg1 : i32, i32
  }
  func.func @transform_1(%arg0: i32, %arg1: i32) -> (i32, i32) {
    %c0_i32 = arith.constant 0 : i32
    return %arg0, %arg1 : i32, i32
  }
  func.func @transform_2(%arg0: i32, %arg1: i32) -> (i32, i32) {
    %c0_i32 = arith.constant 0 : i32
    %c0_i32_0 = arith.constant 0 : i32
    return %arg0, %c0_i32 : i32, i32
  }
  func.func @transform_3(%arg0: i32, %arg1: i32) -> (i32, i32) {
    %c0_i32 = arith.constant 0 : i32
    %c0_i32_0 = arith.constant 0 : i32
    return %arg0, %c0_i32 : i32, i32
  }
  func.func @transform_4(%arg0: i32, %arg1: i32) -> (i32, i32) {
    %c0_i32 = arith.constant 0 : i32
    %c0_i32_0 = arith.constant 0 : i32
    return %arg0, %c0_i32 : i32, i32
  }
  func.func @transform_5(%arg0: i32, %arg1: i32) -> (i32, i32) {
    %c0_i32 = arith.constant 0 : i32
    %c0_i32_0 = arith.constant 0 : i32
    return %arg0, %c0_i32 : i32, i32
  }
}

</mosaic_0001>

<bundles_post_ra>
// kernel: tpu_custom_call.1
= control target key start
LH: loop header
LB: loop body
LE: loop exit
PB: predicated region body
PF: predicated region fallthrough
CT: control target
= control target key end

     0   :  { %s1362_s0 = inlined_call_operand.hbm [shape: f32[16,128], index: 0, kind: input, shape index: {}]   ;;  %s1363_s1 = inlined_call_operand.hbm [shape: f32[16,128], index: 1, kind: input, shape index: {}]   ;;  %s1364_s2 = inlined_call_operand.hbm [shape: f32[16,128], index: 2, kind: output, shape index: {0}]   ;;  %s1365_s3 = inlined_call_operand.hbm [shape: f32[16,128], index: 3, kind: output, shape index: {1}]   ;;  %s1366_s4 = inlined_call_operand.hbm [shape: f32[16,128], index: 4, kind: output, shape index: {2}]   ;;  %s1367_s5 = inlined_call_operand.hbm [shape: f32[16,128], index: 5, kind: output, shape index: {3}]  }
   0x1   :  { %1373 = sst [smem:[#allocation18_spill]] %s1362_s0 }
   0x2   :  { %1374 = sst [smem:[#allocation19_spill]] %s1363_s1 }
   0x3   :  { %11 = vsyncpa [#allocation3], 0 }
   0x4   :  { %13 = vsyncpa [#allocation3 + $0x1], 0 }
   0x5   :  { %14 = vsyncpa [#allocation6], 0 }
   0x6   :  { %16 = vsyncpa [#allocation6 + $0x1], 0 }
   0x7   :  { %17 = vsyncpa [#allocation4], 0 }
   0x8   :  { %19 = vsyncpa [#allocation4 + $0x1], 0 }
   0x9   :  { %20 = vsyncpa [#allocation9], 0 }
   0xa   :  { %22 = vsyncpa [#allocation9 + $0x1], 0 }
   0xb   :  { %23 = vsyncpa [#allocation12], 0 }
   0xc   :  { %25 = vsyncpa [#allocation12 + $0x1], 0  ;;  %s1026_s18 = smov 0   ;;  %s1028_s19 = smov 0  }
   0xd   :  { %s1030_s20 = smov 0   ;;  %s1032_s21 = smov 0  }
   0xe   :  { %s1034_s22 = smov 0   ;;  %s1036_s23 = smov 0  }
   0xf LB: > { %s1057_s24 = sadd.s32 4294967295, %s988_s23   ;;  %s1368_s25 = sadd.s32 4294967294, %s988_s23   ;;  %s988_s23 = sphi %s1036_s23, %s31_s23   ;;  %s984_s22 = sphi %s1034_s22, %s1397_s22   ;;  %s980_s21 = sphi %s1032_s21, %s1396_s21   ;;  %s976_s20 = sphi %s1030_s20, %s1395_s20   ;;  %s972_s19 = sphi %s1028_s19, %s1394_s19   ;;  %s968_s18 = sphi %s1026_s18, %s1393_s18  }
  0x10   : > { %s43_s26 = sadd.s32 1, %s984_s22  ;;  %s52_s27 = sadd.s32 1, %s976_s20 }
  0x11   : > { %p45_p0 = scmp.ge.s32.totalorder %s43_s26, 2  ;;  %p59_p1 = scmp.ne.s32.totalorder %s976_s20, %s972_s19 }
  0x12   : > { %p60_p2 = scmp.eq.s32.totalorder %s988_s23, 0  ;;  %p65_p3 = scmp.ne.s32.totalorder %s972_s19, %s968_s18 }
  0x13   : > { %s1399_s26 = smov (%p45_p0, %s43_s26), 0  ;;  %p66_p5 = scmp.eq.s32.totalorder %s1057_s24, 0 }
  0x14   : > { %p1069_p4 = por %p60_p2, %p59_p1  ;;  %s47_s29 = ssub.s32 %s984_s22, %s1399_s26 }
  0x15   : > { %p117_p6 = scmp.eq.s32.totalorder %s1057_s24, 1  ;;  %p50_p7 = scmp.eq.s32.totalorder %s47_s29, 0 }
  0x16   : > { %p1077_p8 = por %p66_p5, %p65_p3  ;;  %p123_p10 = scmp.eq.s32.totalorder %s1368_s25, 1 }
  0x17   : > { %p1081_p9 = por %p117_p6, %p59_p1  ;;  %p693_p13 = scmp.lt.s32.totalorder %s988_s23, 2 }
  0x18   : > { %s1376_s30 = scalar_select %p1077_p8, 1, 0 }
  0x19   : > { %s1377_s6 = scalar_select %p1081_p9, 1, 0 }
  0x1a   : > { %s1088_s7 = scalar_select %p50_p7, %s976_s20, %s52_s27  }
  0x1b   : > { %p1090_p11 = por %p123_p10, %p65_p3  ;;  %s1097_s9 = sand.u32 1, %s976_s20  }
  0x1c   : > { %s1369_s10 = sshll.u32 %s1097_s9, 3  ;;  %s641_s11 = sshll.u32 %s984_s22, 7 }
  0x1d   : > { %s1378_s8 = scalar_select %p1090_p11, 1, 0 }
  0x1e   : > { %s1379_s0 = sld [smem:[#allocation18_spill]]  ;;  %s225_s15 = scalar_lea.vmem [#allocation2], %s1369_s10 }
  0x1f   : > { %s233_s16 = sshll.u32 %s225_s15, 4  ;;  %p1114_p0 = pnand %p693_p13, %p1069_p4  ;;  %s1110_s16 = int_to_ptr.vmem [resolvable:$true] %s233_s16 }
  0x20   : > { %s222_s27 = scalar_lea.sflag [#allocation3], %s1097_s9 }
  0x21   : > { %p752_p5 = pneg %p1114_p0 }
  0x24   : > { %s1106_s14 = scalar_lea.hbm %s1379_s0, %s641_s11  ;;  %s755_s28 = scalar_lea.hbm %s1379_s0, 256 }
  0x25   : > { %s750_s29 = scalar_lea.hbm %s1106_s14, 128  ;;  %p756_p4 = scmp.lt.u32.totalorder %s1106_s14, %s1379_s0 }
  0x26   : > { %p751_p3 = scmp.ne.s32.totalorder %s1106_s14, %s750_s29  ;;  %p757_p10 = scmp.lt.u32.totalorder %s755_s28, %s750_s29 }
  0x27   : > { %p759_p12 = scmp.lt.u32.totalorder %s750_s29, %s1106_s14 }
  0x28   : > { %p753_p6 = pnand %p752_p5, %p751_p3  ;;  %p758_p13 = por %p757_p10, %p756_p4 }
  0x2a   : > { %p754_p7 = pneg %p753_p6  ;;  %p760_p1 = por %p759_p12, %p758_p13 }
  0x2c   : > { %p761_p2 = pnand %p760_p1, %p754_p7 }
  0x2e   : > { %764 = shalt.err (!%p761_p2)
}
  0x2f   : > { %s765_s10 = scalar_lea.vmem %s1110_s16, 128  ;;  %s990_s12 = smov [#allocation2]  }
  0x30   : > { %p766_p3 = scmp.ne.s32.totalorder %s1110_s16, %s765_s10  ;;  %s770_s13 = sshll.u32 %s990_s12, 4  ;;  %s771_s13 = int_to_ptr.vmem [resolvable:$false] %s770_s13 }
  0x31   : > { %s772_s25 = scalar_lea.vmem %s771_s13, 256  ;;  %p773_p9 = scmp.lt.s32.totalorder %s1110_s16, %s771_s13 }
  0x32   : > { %p768_p6 = pnand %p766_p3, %p752_p5  ;;  %p774_p4 = scmp.lt.s32.totalorder %s772_s25, %s765_s10 }
  0x34   : > { %p769_p11 = pneg %p768_p6  ;;  %p775_p10 = por %p774_p4, %p773_p9 }
  0x36   : > { %p776_p12 = pnand %p775_p10, %p769_p11 }
  0x38   : > { %779 = shalt.err (!%p776_p12)
}
  0x39   : > { %676 = dma.hbm_to_vmem [thread:$0]  (!%p1114_p0), %s1106_s14, 128, %s1110_s16, %s222_s27  }
  0x3a   : > { %p1381_p1 = scmp.lt.s32.totalorder %s988_s23, 3  ;;  %p1382_p2 = scmp.ge.s32.totalorder %s988_s23, 1 }
  0x3b   : > { %s1384_s1 = sld [smem:[#allocation19_spill]]  ;;  %s1385_s12 = sshll.u32 %s1097_s9, 3 }
  0x3c   : > { %p1150_p7 = pnand %p1382_p2, %p1381_p1  ;;  %s244_s13 = scalar_lea.vmem [#allocation5], %s1385_s12 }
  0x3d   : > { %s252_s25 = sshll.u32 %s244_s13, 4  ;;  %s241_s14 = scalar_lea.sflag [#allocation6], %s1097_s9  ;;  %s253_s25 = int_to_ptr.vmem [resolvable:$true] %s252_s25 }
  0x3e   : > { %s1383_s29 = scalar_select %p1150_p7, 1, 0 }
  0x41   : > { %s1159_s15 = scalar_lea.hbm %s1384_s1, %s641_s11  ;;  %s785_s11 = scalar_lea.hbm %s1384_s1, 256 }
  0x42   : > { %s780_s16 = scalar_lea.hbm %s1159_s15, 128  ;;  %p786_p3 = scmp.lt.u32.totalorder %s1159_s15, %s1384_s1 }
  0x43   : > { %p781_p9 = scmp.ne.s32.totalorder %s1159_s15, %s780_s16  ;;  %p787_p6 = scmp.lt.u32.totalorder %s785_s11, %s780_s16 }
  0x44   : > { %p789_p10 = scmp.lt.u32.totalorder %s780_s16, %s1159_s15 }
  0x45   : > { %p783_p11 = pnand %p781_p9, %p752_p5  ;;  %p788_p4 = por %p787_p6, %p786_p3 }
  0x47   : > { %p784_p13 = pneg %p783_p11  ;;  %p790_p12 = por %p789_p10, %p788_p4 }
  0x49   : > { %p791_p1 = pnand %p790_p12, %p784_p13 }
  0x4b   : > { %794 = shalt.err (!%p791_p1)
}
  0x4c   : > { %s795_s9 = scalar_lea.vmem %s253_s25, 128  ;;  %s991_s12 = smov [#allocation5]  }
  0x4d   : > { %p796_p2 = scmp.ne.s32.totalorder %s253_s25, %s795_s9  ;;  %s800_s0 = sshll.u32 %s991_s12, 4  ;;  %s801_s0 = int_to_ptr.vmem [resolvable:$false] %s800_s0 }
  0x4e   : > { %s802_s13 = scalar_lea.vmem %s801_s0, 256  ;;  %p803_p8 = scmp.lt.s32.totalorder %s253_s25, %s801_s0 }
  0x4f   : > { %p798_p9 = pnand %p796_p2, %p752_p5  ;;  %p804_p7 = scmp.lt.s32.totalorder %s802_s13, %s795_s9 }
  0x51   : > { %p799_p11 = pneg %p798_p9  ;;  %p805_p3 = por %p804_p7, %p803_p8 }
  0x53   : > { %p806_p6 = pnand %p805_p3, %p799_p11 }
  0x55   : > { %809 = shalt.err (!%p806_p6)
}
  0x56   : > { %679 = dma.hbm_to_vmem [thread:$0]  (!%p1114_p0), %s1159_s15, 128, %s253_s25, %s241_s14  }
  0x57   : > { %p1386_p13 = scmp.ne.s32.totalorder %s1383_s29, 0 }
  0x58   : > { %s1186_s16 = sand.u32 (!%p1386_p13), 1, %s972_s19   ;;  %p1387_p8 = scmp.ne.s32.totalorder (!%p1386_p13), %s1376_s30, 0 }
  0x59   : > { %261 = sbr.rel (%p1386_p13) target bundleno = 212 (0xd4), region = 28  ;;  %s1189_s27 = sshll.u32 (!%p1386_p13), %s1186_s16, 3 }
  0x5a   : > { %s264_s11 = scalar_lea.sflag (!%p1386_p13), [#allocation3], %s1186_s16  ;;  %s267_s10 = scalar_lea.vmem (!%p1386_p13), [#allocation2], %s1189_s27 }
  0x60   : > { %947 = dma.done.wait (%p1387_p8), %s264_s11, 128  }
  0x61   : > { %949 = vsyncadd (%p1387_p8), %s264_s11, 4294967168  ;;  %s273_s17 = scalar_lea.sflag [#allocation6], %s1186_s16  ;;  %s276_s29 = scalar_lea.vmem [#allocation5], %s1189_s27 }
  0x62   : > { %951 = dma.done.wait (%p1387_p8), %s273_s17, 128  }
  0x63   : > { %953 = vsyncadd (%p1387_p8), %s273_s17, 4294967168  ;;  %s1204_s15 = sshll.u32 %s980_s21, 7  ;;  %v331_v0 = vld [vmem:[%s267_s10] sm:$0xff]  ;;  %v332_v1 = vld [vmem:[%s276_s29] sm:$0xff]  ;;  %s322_s9 = scalar_lea.vmem [#allocation11], %s1189_s27 }
  0x64   : > { %v333_v2 = vand.u32 2147483647, %v331_v0  ;;  %s1210_s28 = scalar_lea.hbm %s1367_s5, %s1204_s15  ;;  %s440_s12 = sshll.u32 %s322_s9, 4  ;;  %371 = vst [vmem:[%s322_s9] sm:$0xff] %v332_v1  ;;  %s1213_s12 = int_to_ptr.vmem [resolvable:$true] %s440_s12 }
  0x65   : > { %s388_s21 = scalar_lea.sflag [#allocation12], %s1186_s16  ;;  %s810_s30 = scalar_lea.vmem %s1213_s12, 128 }
  0x66   : > { %v334_v3 = vsub.f32 0.0, %v333_v2  ;;  %p811_p0 = scmp.ne.s32.totalorder %s1213_s12, %s810_s30  ;;  %p1388_p5 = scmp.ne.s32.totalorder %s1377_s6, 0 }
  0x67   : > { %s992_s0 = smov [#allocation11]  }
  0x68   : > { %v335_v4 = vmul.f32 1.442695, %v334_v3  ;;  %p812_p7 = pnand %p811_p0, %p1388_p5  ;;  %s814_s13 = sshll.u32 %s992_s0, 4  ;;  %s815_s13 = int_to_ptr.vmem [resolvable:$false] %s814_s13 }
  0x69   : > { %s816_s11 = scalar_lea.vmem %s815_s13, 256  ;;  %p817_p10 = scmp.lt.s32.totalorder %s1213_s12, %s815_s13 }
  0x6a   : > { %p813_p4 = pneg %p812_p7  ;;  %p818_p12 = scmp.lt.s32.totalorder %s816_s11, %s810_s30 }
  0x6c   : > { %p819_p1 = por %p818_p12, %p817_p10 }
  0x6e   : > { %p820_p2 = pnand %p819_p1, %p813_p4 }
  0x70   : > { %823 = shalt.err (!%p820_p2)
}
  0x71   : > { %s824_s10 = scalar_lea.hbm %s1210_s28, 128  ;;  %s828_s25 = scalar_lea.hbm %s1367_s5, 256 }
  0x72   : > { %p825_p9 = scmp.ne.s32.totalorder %s1210_s28, %s824_s10  ;;  %p829_p6 = scmp.lt.u32.totalorder %s1210_s28, %s1367_s5 }
  0x73   : > { %p830_p13 = scmp.lt.u32.totalorder %s828_s25, %s824_s10  ;;  %p832_p0 = scmp.lt.u32.totalorder %s824_s10, %s1210_s28 }
  0x74   : > { %p826_p11 = pnand %p825_p9, %p1388_p5 }
  0x75   : > { %p831_p8 = por %p830_p13, %p829_p6 }
  0x76   : > { %p827_p3 = pneg %p826_p11 }
  0x77   : > { %p833_p7 = por %p832_p0, %p831_p8 }
  0x79   : > { %p834_p4 = pnand %p833_p7, %p827_p3 }
  0x7b   : > { %837 = shalt.err (!%p834_p4)
}
  0x7c   : > { %668 = dma.vmem_to_hbm [thread:$0]  (%p1388_p5), %s1213_s12, 128, %s1210_s28, %s388_s21   ;;  %744 = vpow2.f32 %v335_v4  ;;  %vm351_vm0 = vcmp.ge.f32.partialorder %v331_v0, 0.0  ;;  %v338_v9 = vmax.f32 %v331_v0, 0.0  ;;  %v339_v10 = vmul.f32 %v332_v1, %v331_v0 }
  0x7d   : > { %s315_s30 = scalar_lea.vmem [#allocation10], %s1189_s27  ;;  %s377_s28 = sand.u32 1, %s1057_s24  }
  0x7e   : > { %s427_s0 = sshll.u32 %s315_s30, 4  ;;  %v340_v17 = vsub.f32 %v338_v9, %v339_v10  ;;  %s308_s12 = scalar_lea.vmem [#allocation8], %s1189_s27  ;;  %s1240_s0 = int_to_ptr.vmem [resolvable:$true] %s427_s0 }
  0x7f   : > { %s414_s21 = sshll.u32 %s308_s12, 4  ;;  %s1372_s13 = scalar_lea.vmem [#allocation7], %s1189_s27  ;;  %s1251_s21 = int_to_ptr.vmem [resolvable:$true] %s414_s21 }
  0x80   : > { %s401_s11 = sshll.u32 %s1372_s13, 4  ;;  %s1249_s29 = scalar_lea.hbm %s1365_s3, %s1204_s15  ;;  %s1265_s11 = int_to_ptr.vmem [resolvable:$true] %s401_s11 }
  0x81   : > { %s1257_s14 = scalar_lea.hbm %s1366_s4, %s1204_s15  ;;  %s1267_s10 = scalar_lea.sflag [#allocation9], %s377_s28 }
  0x82   : > { %s838_s17 = scalar_lea.vmem %s1251_s21, 128  ;;  %s993_s24 = smov [#allocation8]  }
  0x83   : > { %p839_p10 = scmp.ne.s32.totalorder %s1251_s21, %s838_s17  ;;  %s842_s25 = sshll.u32 %s993_s24, 4  ;;  %s843_s25 = int_to_ptr.vmem [resolvable:$false] %s842_s25 }
  0x84   : > { %s844_s1 = scalar_lea.vmem %s843_s25, 256  ;;  %p845_p2 = scmp.lt.s32.totalorder %s1251_s21, %s843_s25 }
  0x85   : > { %p840_p12 = pnand %p839_p10, %p1388_p5  ;;  %p846_p9 = scmp.lt.s32.totalorder %s844_s1, %s838_s17 }
  0x86   : > { %v745_v5 = vpop.eup %744 }
  0x87   : > { %v337_v6 = vadd.f32 1.0, %v745_v5  ;;  %v344_v7 = vmul.f32 -0.5, %v745_v5  ;;  %v347_v11 = vand.u32 2147483647, %v745_v5  ;;  %v352_v12 = vsel %vm351_vm0, 1.0, %v745_v5  ;;  %p841_p1 = pneg %p840_p12  ;;  %p847_p11 = por %p846_p9, %p845_p2 }
  0x89   : > { %746 = vrcp.f32 %v337_v6  ;;  %v345_v8 = vadd.f32 1.0, %v344_v7  ;;  %vm348_vm1 = vcmp.lt.f32.partialorder %v347_v11, 0.0004427343  ;;  %p848_p3 = pnand %p847_p11, %p841_p1 }
  0x8a   : > { %748 = vlog2.f32 %v337_v6 }
  0x8b   : > { %v346_v14 = vmul.f32 %v745_v5, %v345_v8 }
  0x93   : > { %v747_v13 = vpop.eup %746 }
  0x94   : > { %v749_v15 = vpop.eup %748  ;;  %v354_v16 = vmul.f32 %v747_v13, %v352_v12 }
  0x95   : > { %v343_v18 = vmul.f32 0.6931472, %v749_v15 }
  0x96   : > { %v355_v19 = vmul.f32 %v354_v16, %v332_v1  ;;  %368 = vst [vmem:[%s315_s30] sm:$0xff] %v354_v16  ;;  %s1263_s30 = scalar_lea.hbm %s1364_s2, %s1204_s15 }
  0x97   : > { %v349_v20 = vsel %vm348_vm1, %v346_v14, %v343_v18 }
  0x98   : > { %v350_v21 = vadd.f32 %v349_v20, %v340_v17  ;;  %365 = vst [vmem:[%s308_s12] sm:$0xff] %v355_v19 }
  0x99   : > { %851 = shalt.err (!%p848_p3)
}
  0x9a   : > { %s852_s15 = scalar_lea.hbm %s1249_s29, 128  ;;  %s856_s13 = scalar_lea.hbm %s1365_s3, 256 }
  0x9b   : > { %p853_p6 = scmp.ne.s32.totalorder %s1249_s29, %s852_s15  ;;  %p857_p0 = scmp.lt.u32.totalorder %s1249_s29, %s1365_s3 }
  0x9c   : > { %p858_p7 = scmp.lt.u32.totalorder %s856_s13, %s852_s15  ;;  %p860_p10 = scmp.lt.u32.totalorder %s852_s15, %s1249_s29 }
  0x9d   : > { %p854_p13 = pnand %p853_p6, %p1388_p5 }
  0x9e   : > { %p859_p4 = por %p858_p7, %p857_p0 }
  0x9f   : > { %p855_p8 = pneg %p854_p13 }
  0xa0   : > { %p861_p12 = por %p860_p10, %p859_p4 }
  0xa2   : > { %p862_p1 = pnand %p861_p12, %p855_p8 }
  0xa4   : > { %865 = shalt.err (!%p862_p1)
}
  0xa5   : > { %666 = dma.vmem_to_hbm [thread:$0]  (%p1388_p5), %s1251_s21, 128, %s1249_s29, %s1267_s10  }
  0xa6   : > { %s1389_s1 = scalar_lea.vmem [#allocation7], %s1189_s27  ;;  %s866_s17 = scalar_lea.vmem %s1240_s0, 128 }
  0xa7   : > { %362 = vst [vmem:[%s1389_s1] sm:$0xff] %v350_v21  ;;  %p867_p2 = scmp.ne.s32.totalorder %s1240_s0, %s866_s17  ;;  %s994_s25 = smov [#allocation10]  }
  0xa8   : > { %s870_s15 = sshll.u32 %s994_s25, 4  ;;  %s871_s15 = int_to_ptr.vmem [resolvable:$false] %s870_s15 }
  0xa9   : > { %p868_p9 = pnand %p867_p2, %p1388_p5  ;;  %s872_s28 = scalar_lea.vmem %s871_s15, 256 }
  0xaa   : > { %p873_p3 = scmp.lt.s32.totalorder %s1240_s0, %s871_s15  ;;  %p874_p6 = scmp.lt.s32.totalorder %s872_s28, %s866_s17 }
  0xab   : > { %p869_p11 = pneg %p868_p9 }
  0xac   : > { %p875_p13 = por %p874_p6, %p873_p3 }
  0xae   : > { %p876_p8 = pnand %p875_p13, %p869_p11 }
  0xb0   : > { %879 = shalt.err (!%p876_p8)
}
  0xb1   : > { %s880_s27 = scalar_lea.hbm %s1257_s14, 128  ;;  %s884_s12 = scalar_lea.hbm %s1366_s4, 256 }
  0xb2   : > { %p881_p0 = scmp.ne.s32.totalorder %s1257_s14, %s880_s27  ;;  %p885_p10 = scmp.lt.u32.totalorder %s1257_s14, %s1366_s4 }
  0xb3   : > { %p886_p12 = scmp.lt.u32.totalorder %s884_s12, %s880_s27  ;;  %p888_p2 = scmp.lt.u32.totalorder %s880_s27, %s1257_s14 }
  0xb4   : > { %p882_p7 = pnand %p881_p0, %p1388_p5 }
  0xb5   : > { %p887_p1 = por %p886_p12, %p885_p10 }
  0xb6   : > { %p883_p4 = pneg %p882_p7 }
  0xb7   : > { %p889_p9 = por %p888_p2, %p887_p1 }
  0xb9   : > { %p890_p11 = pnand %p889_p9, %p883_p4 }
  0xbb   : > { %893 = shalt.err (!%p890_p11)
}
  0xbc   : > { %667 = dma.vmem_to_hbm [thread:$0]  (%p1388_p5), %s1240_s0, 128, %s1257_s14, %s1267_s10  }
  0xbd   : > { %s373_s24 = scalar_lea.sflag [#allocation4], %s1186_s16  ;;  %s894_s1 = scalar_lea.vmem %s1265_s11, 128 }
  0xbe   : > { %p895_p3 = scmp.ne.s32.totalorder %s1265_s11, %s894_s1  ;;  %s995_s17 = smov [#allocation7]  }
  0xbf   : > { %s898_s25 = sshll.u32 %s995_s17, 4  ;;  %s899_s25 = int_to_ptr.vmem [resolvable:$false] %s898_s25 }
  0xc0   : > { %p896_p6 = pnand %p895_p3, %p1388_p5  ;;  %s900_s15 = scalar_lea.vmem %s899_s25, 256 }
  0xc1   : > { %p901_p8 = scmp.lt.s32.totalorder %s1265_s11, %s899_s25  ;;  %p902_p0 = scmp.lt.s32.totalorder %s900_s15, %s894_s1 }
  0xc2   : > { %p897_p13 = pneg %p896_p6 }
  0xc3   : > { %p903_p7 = por %p902_p0, %p901_p8 }
  0xc5   : > { %p904_p4 = pnand %p903_p7, %p897_p13 }
  0xc7   : > { %907 = shalt.err (!%p904_p4)
}
  0xc8   : > { %s908_s16 = scalar_lea.hbm %s1263_s30, 128  ;;  %s912_s10 = scalar_lea.hbm %s1364_s2, 256 }
  0xc9   : > { %p909_p10 = scmp.ne.s32.totalorder %s1263_s30, %s908_s16  ;;  %p913_p2 = scmp.lt.u32.totalorder %s1263_s30, %s1364_s2 }
  0xca   : > { %p914_p9 = scmp.lt.u32.totalorder %s912_s10, %s908_s16  ;;  %p916_p3 = scmp.lt.u32.totalorder %s908_s16, %s1263_s30 }
  0xcb   : > { %p910_p12 = pnand %p909_p10, %p1388_p5 }
  0xcc   : > { %p915_p11 = por %p914_p9, %p913_p2 }
  0xcd   : > { %p911_p1 = pneg %p910_p12 }
  0xce   : > { %p917_p6 = por %p916_p3, %p915_p11 }
  0xd0   : > { %p918_p13 = pnand %p917_p6, %p911_p1 }
  0xd2   : > { %921 = shalt.err (!%p918_p13)
}
  0xd3   : > { %665 = dma.vmem_to_hbm [thread:$0]  (%p1388_p5), %s1265_s11, 128, %s1263_s30, %s373_s24  }
  0xd4 PF: > { %s452_s21 = sand.u32 1, %s968_s18   ;;  %p1390_p8 = scmp.ne.s32.totalorder %s1378_s8, 0 }
  0xd5   : > { %p1391_p0 = scmp.ge.s32.totalorder %s988_s23, 2  ;;  %s453_s29 = scalar_lea.sflag [#allocation4], %s452_s21 }
  0xd7   : > { %p681_p7 = pnand %p1391_p0, %p1390_p8 }
  0xd9   : > { %955 = dma.done.wait (!%p681_p7), %s453_s29, 128  }
  0xda   : > { %957 = vsyncadd (!%p681_p7), %s453_s29, 4294967168  ;;  %s1392_s12 = sadd.s32 4294967294, %s988_s23  }
  0xdb   : > { %s461_s13 = sand.u32 1, %s1392_s12  }
  0xdc   : > { %s462_s9 = scalar_lea.sflag [#allocation9], %s461_s13 }
  0xdd   : > { %959 = dma.done.wait (!%p681_p7), %s462_s9, 256  }
  0xde   : > { %961 = vsyncadd (!%p681_p7), %s462_s9, 4294967040  ;;  %s480_s6 = scalar_lea.sflag [#allocation12], %s452_s21 }
  0xdf   : > { %963 = dma.done.wait (!%p681_p7), %s480_s6, 128  }
  0xe0   : > { %965 = vsyncadd (!%p681_p7), %s480_s6, 4294967168  ;;  %s31_s23 = sadd.s32 1, %s988_s23   ;;  %s1393_s18 = smov %s972_s19 }
  0xe1   : > { %p28_p5 = scmp.ge.s32.totalorder %s31_s23, 4   ;;  %s1394_s19 = smov %s976_s20 }
  0xe2   : > { %s1395_s20 = smov %s1088_s7  ;;  %s1396_s21 = smov %s984_s22 }
  0xe3   : > { %s1397_s22 = smov %s1399_s26  ;;  %30 = sbr.rel (!%p28_p5) target bundleno = 15 (0xf), region = 139 }
  0xea   :  { %485 = vsyncpa [#allocation3], 1 }
  0xeb   :  { %487 = vsyncpa [#allocation3 + $0x1], 1 }
  0xec   :  { %488 = vsyncpa [#allocation6], 1 }
  0xed   :  { %490 = vsyncpa [#allocation6 + $0x1], 1 }
  0xee   :  { %491 = vsyncpa [#allocation4], 1 }
  0xef   :  { %493 = vsyncpa [#allocation4 + $0x1], 1 }
  0xf0   :  { %494 = vsyncpa [#allocation9], 1 }
  0xf1   :  { %496 = vsyncpa [#allocation9 + $0x1], 1 }
  0xf2   :  { %497 = vsyncpa [#allocation12], 1 }
  0xf3   :  { %499 = vsyncpa [#allocation12 + $0x1], 1 }

</bundles_post_ra>
